<compile_context>
chip_gen: v7x
topology: tpu7x:2x2x1
jax: 0.10.0
libtpu: 0.0.40
codegen_flags: <defaults>
</compile_context>

<pallas_src>
import functools

import jax
import jax.numpy as jnp
from jax import lax
from jax.experimental import pallas as pl
from jax.experimental.pallas import tpu as pltpu


# ------------------------------ helpers ------------------------------

def _pick_tile(dim, prefs):
    for t in prefs:
        if dim % t == 0:
            return t
    return dim


# ------------------------------ tiled matmul ------------------------------

def _matmul_kernel(a_ref, b_ref, o_ref, acc_ref):
    @pl.when(pl.program_id(2) == 0)
    def _():
        acc_ref[...] = jnp.zeros_like(acc_ref)

    acc_ref[...] += jnp.dot(a_ref[...].astype(jnp.bfloat16),
                            b_ref[...].astype(jnp.bfloat16),
                            preferred_element_type=jnp.float32)

    @pl.when(pl.program_id(2) == pl.num_programs(2) - 1)
    def _():
        o_ref[...] = acc_ref[...].astype(o_ref.dtype)


def matmul_pallas(a, b):
    """a: (M, K), b: (K, N) -> (M, N) f32.  bf16 MXU feeds, f32 accumulation."""
    M, K = a.shape
    K2, N = b.shape
    assert K == K2
    tm = _pick_tile(M, (256, 128, 8))
    tn = _pick_tile(N, (256, 128))
    tk = _pick_tile(K, (512, 256, 128))
    return pl.pallas_call(
        _matmul_kernel,
        out_shape=jax.ShapeDtypeStruct((M, N), jnp.float32),
        grid=(M // tm, N // tn, K // tk),
        in_specs=[pl.BlockSpec((tm, tk), lambda i, j, kk: (i, kk)),
                  pl.BlockSpec((tk, tn), lambda i, j, kk: (kk, j))],
        out_specs=pl.BlockSpec((tm, tn), lambda i, j, kk: (i, j)),
        scratch_shapes=[pltpu.VMEM((tm, tn), jnp.float32)],
        compiler_params=pltpu.CompilerParams(
            dimension_semantics=("parallel", "parallel", "arbitrary")),
    )(a, b)


# ------------------------------ LayerNorm ------------------------------

def _ln_kernel(x_ref, w_ref, b_ref, o_ref, *, eps):
    x = x_ref[...]
    mu = jnp.mean(x, axis=-1, keepdims=True)
    var = jnp.mean((x - mu) ** 2, axis=-1, keepdims=True)    # biased, like torch
    o_ref[...] = (x - mu) * lax.rsqrt(var + eps) * w_ref[...] + b_ref[...]


def layernorm_pallas(x2d, w, b, eps=1e-5):
    M, C = x2d.shape
    tm = _pick_tile(M, (512, 256, 128, 8))
    return pl.pallas_call(
        functools.partial(_ln_kernel, eps=eps),
        out_shape=jax.ShapeDtypeStruct((M, C), jnp.float32),
        grid=(M // tm,),
        in_specs=[pl.BlockSpec((tm, C), lambda i: (i, 0)),
                  pl.BlockSpec((1, C), lambda i: (0, 0)),
                  pl.BlockSpec((1, C), lambda i: (0, 0))],
        out_specs=pl.BlockSpec((tm, C), lambda i: (i, 0)),
        compiler_params=pltpu.CompilerParams(dimension_semantics=("parallel",)),
    )(x2d, w.reshape(1, C), b.reshape(1, C))


# --------------- fused attention tail: GroupNorm + rk*v + gating ---------------

def _attn_tail_kernel(core_ref, r_ref, k_ref, v_ref, g_ref, gw_ref, gb_ref,
                      rk_ref, o_ref, *, H, N, eps):
    tm, C = core_ref.shape
    xc = core_ref[...].reshape(tm, H, N)
    mu = jnp.mean(xc, axis=-1, keepdims=True)
    var = jnp.mean((xc - mu) ** 2, axis=-1, keepdims=True)
    y = (xc - mu) * lax.rsqrt(var + eps)
    y = y * gw_ref[...].reshape(1, H, N) + gb_ref[...].reshape(1, H, N)
    r = r_ref[...].reshape(tm, H, N)
    k = k_ref[...].reshape(tm, H, N)
    v = v_ref[...].reshape(tm, H, N)
    rk = jnp.sum(r * k * rk_ref[...].reshape(1, H, N), axis=-1, keepdims=True)
    y = y + rk * v
    o_ref[...] = y.reshape(tm, C) * g_ref[...]


def attn_tail_pallas(core2d, r2d, k2d, v2d, g2d, gn_w, gn_b, r_k, H, N, eps=64e-5):
    M, C = core2d.shape
    tm = _pick_tile(M, (256, 128, 8))
    blk = pl.BlockSpec((tm, C), lambda i: (i, 0))
    vec = pl.BlockSpec((1, C), lambda i: (0, 0))
    return pl.pallas_call(
        functools.partial(_attn_tail_kernel, H=H, N=N, eps=eps),
        out_shape=jax.ShapeDtypeStruct((M, C), jnp.float32),
        grid=(M // tm,),
        in_specs=[blk, blk, blk, blk, blk, vec, vec, vec],
        out_specs=blk,
        compiler_params=pltpu.CompilerParams(dimension_semantics=("parallel",)),
    )(core2d, r2d, k2d, v2d, g2d,
      gn_w.reshape(1, C), gn_b.reshape(1, C), r_k.reshape(1, C))


# ------------------------------ fused FFN ------------------------------

def _ffn_kernel(x_ref, xx_ref, xk_ref, wk_ref, wv_ref, o_ref, acc_ref):
    j = pl.program_id(1)

    @pl.when(j == 0)
    def _():
        acc_ref[...] = jnp.zeros_like(acc_ref)

    km = (x_ref[...] + xx_ref[...] * xk_ref[...]).astype(jnp.bfloat16)
    h = jnp.dot(km, wk_ref[...], preferred_element_type=jnp.float32)
    h = jnp.maximum(h, 0.0)
    h = h * h
    acc_ref[...] += jnp.dot(h.astype(jnp.bfloat16), wv_ref[...],
                            preferred_element_type=jnp.float32)

    @pl.when(j == pl.num_programs(1) - 1)
    def _():
        o_ref[...] = acc_ref[...]


def ffn_pallas(x2d, xx2d, xk, wk_bf16, wv_bf16):
    M, C = x2d.shape
    K4 = wk_bf16.shape[1]
    tm = _pick_tile(M, (256, 128, 8))
    tj = _pick_tile(K4, (512, 256, 128))
    return pl.pallas_call(
        _ffn_kernel,
        out_shape=jax.ShapeDtypeStruct((M, C), jnp.float32),
        grid=(M // tm, K4 // tj),
        in_specs=[pl.BlockSpec((tm, C), lambda i, j: (i, 0)),
                  pl.BlockSpec((tm, C), lambda i, j: (i, 0)),
                  pl.BlockSpec((1, C), lambda i, j: (0, 0)),
                  pl.BlockSpec((C, tj), lambda i, j: (0, j)),
                  pl.BlockSpec((tj, C), lambda i, j: (j, 0))],
        out_specs=pl.BlockSpec((tm, C), lambda i, j: (i, 0)),
        scratch_shapes=[pltpu.VMEM((tm, C), jnp.float32)],
        compiler_params=pltpu.CompilerParams(
            dimension_semantics=("parallel", "arbitrary")),
    )(x2d, xx2d, xk.reshape(1, C), wk_bf16, wv_bf16)


# ----------------------- chunked RWKV7 recurrence kernel -----------------------

def _rwkv7_chunk_kernel(q_ref, w_ref, k_ref, v_ref, z_ref, a_ref, y_ref, st_ref):
    """One (batch*head) block, one chunk of L timesteps per grid step.

    Semantics per t (reference WindBackstepping forward):
      w_t = exp(-exp(w_raw_t));  sa_t[i] = z_t[i] * sum_j S_{t-1}[i,j]
      S_t[i,j] = w_t[i]*S_{t-1}[i,j] + sa_t[i]*a_t[j] + k_t[i]*v_t[j]
      y_t[i]   = sum_j S_t[i,j]*q_t[j]
    Chunked closed form (W_t = prod_{u<=t} w_u within the chunk):
      y_t = W_t * [ S_0 q_t + sum_{r<=t} ((a_r.q_t) sa_r + (v_r.q_t) k_r) / W_r ]
    The state is carried transposed: st_ref[j, i] = S[i, j].
    """
    c = pl.program_id(1)

    @pl.when(c == 0)
    def _():
        st_ref[...] = jnp.zeros_like(st_ref)

    L, N = q_ref.shape
    f32 = jnp.float32

    q = q_ref[...]
    kmat = k_ref[...]
    vmat = v_ref[...]
    zmat = z_ref[...]
    amat = a_ref[...]
    st0 = st_ref[...]                                   # (N, N) = S_0^T

    # decay, hoisted out of any per-timestep loop; cumulative via tril matmul
    logw = -jnp.exp(w_ref[...])                         # (L, N): log w_t
    row = lax.broadcasted_iota(jnp.int32, (L, L), 0)
    col = lax.broadcasted_iota(jnp.int32, (L, L), 1)
    incl = row >= col                                   # inclusive causal mask
    tril = incl.astype(f32)
    clw = jnp.dot(tril, logw, preferred_element_type=f32)   # cumulative log decay
    w_cum = jnp.exp(clw)                                # W_t
    w_inv = jnp.exp(-clw)                               # 1 / W_t
    w_step = jnp.exp(logw)                              # w_t

    # sa_t = z_t * s_{t-1}, where s obeys s_t = (w_t + alpha_t z_t)*s_{t-1} + nu_t k_t
    alpha = jnp.sum(amat, axis=1, keepdims=True)        # (L, 1)
    nu = jnp.sum(vmat, axis=1, keepdims=True)           # (L, 1)
    d = w_step + alpha * zmat                           # (L, N)
    e = nu * kmat                                       # (L, N)
    s0 = jnp.sum(st0, axis=0, keepdims=True)            # (1, N) row-sums of S_0

    # Hillis-Steele inclusive scan of the first-order recurrence (log2(L) rounds)
    A_c, B_c = d, e
    off = 1
    while off < L:
        pad1 = jnp.ones((off, N), f32)
        pad0 = jnp.zeros((off, N), f32)
        A_sh = jnp.concatenate([pad1, A_c[:L - off, :]], axis=0)
        B_sh = jnp.concatenate([pad0, B_c[:L - off, :]], axis=0)
        B_c = A_c * B_sh + B_c
        A_c = A_c * A_sh
        off *= 2
    s_incl = A_c * s0 + B_c                             # (L, N): s_t
    if L > 1:
        s_prev = jnp.concatenate([s0, s_incl[:L - 1, :]], axis=0)
    else:
        s_prev = s0
    sa = zmat * s_prev                                  # (L, N)

    # outputs: inter-chunk + masked intra-chunk contributions (MXU)
    aq = jnp.einsum('td,rd->tr', q, amat)               # a_r . q_t
    vq = jnp.einsum('td,rd->tr', q, vmat)               # v_r . q_t
    aq = jnp.where(incl, aq, 0.0)
    vq = jnp.where(incl, vq, 0.0)
    sa_n = sa * w_inv
    k_n = kmat * w_inv
    y_intra = (jnp.dot(aq, sa_n, preferred_element_type=f32)
               + jnp.dot(vq, k_n, preferred_element_type=f32))
    y_inter = jnp.dot(q, st0, preferred_element_type=f32)     # (S_0 q_t) laid by i
    y_ref[...] = w_cum * (y_inter + y_intra)

    # state carry: S_L^T = S_0^T * W_L + A^T (SA * W_L/W_r) + V^T (K * W_L/W_r)
    w_last = w_cum[L - 1:, :]                           # (1, N)
    sa_c = sa_n * w_last
    k_c = k_n * w_last
    st_ref[...] = (st0 * w_last
                   + jnp.einsum('rj,ri->ji', amat, sa_c)
                   + jnp.einsum('rj,ri->ji', vmat, k_c))


def rwkv7_pallas(q, w, k, v, z, a):
    """q, w, k, v, z, a: (B, T, H, N) f32 -> (B, T, H*N) f32."""
    B, T, H, N = q.shape
    BH = B * H
    L = _pick_tile(T, (32, 16, 8))          # chunk length (falls back to T)
    NC = T // L

    def prep(x):                            # (B,T,H,N) -> (BH, T, N), lane-dense
        return x.transpose(0, 2, 1, 3).reshape(BH, T, N).astype(jnp.float32)

    qs, ws, ks, vs, zs, as_ = (prep(t) for t in (q, w, k, v, z, a))
    spec = pl.BlockSpec((None, L, N), lambda i, c: (i, c, 0))

    y = pl.pallas_call(
        _rwkv7_chunk_kernel,
        out_shape=jax.ShapeDtypeStruct((BH, T, N), jnp.float32),
        grid=(BH, NC),
        in_specs=[spec] * 6,
        out_specs=spec,
        scratch_shapes=[pltpu.VMEM((N, N), jnp.float32)],
        compiler_params=pltpu.CompilerParams(
            dimension_semantics=("parallel", "arbitrary")),
    )(qs, ws, ks, vs, zs, as_)

    return y.reshape(B, H, T, N).transpose(0, 2, 1, 3).reshape(B, T, H * N)


# ----------------------------- pure-JAX reference -----------------------------

def rwkv7_ref(q, w, k, v, z, a):
    B, T, H, N = q.shape
    w = jnp.exp(-jnp.exp(w))
    S = jnp.zeros((B, H, N, N), jnp.float32)
    ys = []
    for t in range(T):
        zt, kt, vt, at, qt, wt = z[:, t], k[:, t], v[:, t], a[:, t], q[:, t], w[:, t]
        sa = zt * jnp.sum(S, axis=-1)
        S = (S * wt[..., :, None] + sa[..., :, None] * at[..., None, :]
             + kt[..., :, None] * vt[..., None, :])
        ys.append(jnp.sum(S * qt[..., None, :], axis=-1))
    y = jnp.stack(ys, axis=1)
    return y.reshape(B, T, H * N)


def _forward_ref(p, x, v_first):
    B, T, C = x.shape
    H, N = p['r_k'].shape

    def ln(zz, w, b, eps=1e-5):
        mu = jnp.mean(zz, -1, keepdims=True)
        var = jnp.mean((zz - mu) ** 2, -1, keepdims=True)
        return (zz - mu) * lax.rsqrt(var + eps) * w + b

    def time_shift(zz):
        return jnp.concatenate([jnp.zeros_like(zz[:, :1]), zz[:, :-1]], axis=1)

    x = ln(x, p['ln0_w'], p['ln0_b'])

    x1 = ln(x, p['ln1_w'], p['ln1_b'])
    xx = time_shift(x1) - x1
    xr = x1 + xx * p['x_r']
    xw = x1 + xx * p['x_w']
    xk_ = x1 + xx * p['x_k']
    xv = x1 + xx * p['x_v']
    xa = x1 + xx * p['x_a']
    xg = x1 + xx * p['x_g']

    r = xr @ p['Wr']
    k = xk_ @ p['Wk']
    v = xv @ p['Wv']
    w = -jax.nn.softplus(-(p['w0'] + jnp.tanh(xw @ p['w1']) @ p['w2'])) - 0.5
    a = jax.nn.sigmoid(p['a0'] + (xa @ p['a1']) @ p['a2'])
    g = jax.nn.sigmoid(xg @ p['g1']) @ p['g2']

    v_first = v
    kk = k * p['k_k']
    kkh = kk.reshape(B, T, H, N)
    kkh = kkh / jnp.maximum(jnp.sqrt(jnp.sum(kkh * kkh, -1, keepdims=True)), 1e-12)
    kk = kkh.reshape(B, T, C)
    k = k * (1.0 + (a - 1.0) * p['k_a'])

    core = rwkv7_ref(r.reshape(B, T, H, N), w.reshape(B, T, H, N),
                     k.reshape(B, T, H, N), v.reshape(B, T, H, N),
                     (-kk).reshape(B, T, H, N), (kk * a).reshape(B, T, H, N))

    y = core.reshape(B * T, H, N)
    mu = jnp.mean(y, -1, keepdims=True)
    var = jnp.mean((y - mu) ** 2, -1, keepdims=True)
    y = ((y - mu) * lax.rsqrt(var + 64e-5) * p['gn_w'].reshape(1, H, N)
         + p['gn_b'].reshape(1, H, N)).reshape(B, T, C)
    rk = jnp.sum(r.reshape(B, T, H, N) * k.reshape(B, T, H, N) * p['r_k'],
                 -1, keepdims=True)
    y = y + (rk * v.reshape(B, T, H, N)).reshape(B, T, C)
    x = x + (y * g) @ p['Wo']

    x2 = ln(x, p['ln2_w'], p['ln2_b'])
    xxf = time_shift(x2) - x2
    km = x2 + xxf * p['ffn_x_k']
    h = jnp.maximum(km @ p['Wk_ffn'], 0.0) ** 2
    x = x + h @ p['Wv_ffn']
    return x, v_first


# ----------------------------- Block_v2 forward (Pallas) -----------------------------

def _forward_pallas(p, x, v_first):
    B, T, C = x.shape
    H, N = p['r_k'].shape
    M = B * T
    bf16 = jnp.bfloat16

    def ln(x_btc, w, b):
        return layernorm_pallas(x_btc.reshape(M, C), w, b).reshape(B, T, C)

    def time_shift(zz):   # ZeroPad2d((0,0,1,-1)): out[t] = in[t-1], out[0] = 0
        return jnp.concatenate([jnp.zeros_like(zz[:, :1]), zz[:, :-1]], axis=1)

    # group_id * loops_per_group == 0 branch: ln0 applied, v_first = v
    x = ln(x, p['ln0_w'], p['ln0_b'])

    # ---------------- attention (RWKV_Tmix_x070_v2) ----------------
    x1 = ln(x, p['ln1_w'], p['ln1_b'])
    xx = time_shift(x1) - x1

    # fused token-shift projections: [x1 | xx] @ [[W], [diag(mix) W]] for all six.
    # (weight stacking would be precomputed / cached in a real model)
    def stack2(wmat, mix):
        return jnp.concatenate([wmat, mix.reshape(C, 1) * wmat], axis=0)

    D = p['w1'].shape[1]
    DG = p['g1'].shape[1]
    w_big = jnp.concatenate(
        [stack2(p['Wr'], p['x_r']), stack2(p['Wk'], p['x_k']),
         stack2(p['Wv'], p['x_v']), stack2(p['w1'], p['x_w']),
         stack2(p['a1'], p['x_a']), stack2(p['g1'], p['x_g'])],
        axis=1).astype(bf16)
    a_in = jnp.concatenate([x1.reshape(M, C), xx.reshape(M, C)], axis=-1)
    proj = matmul_pallas(a_in, w_big)                      # (M, 3C + 2D + DG)

    r = proj[:, 0:C]
    k = proj[:, C:2 * C]
    v = proj[:, 2 * C:3 * C]
    wl = proj[:, 3 * C:3 * C + D]
    al = proj[:, 3 * C + D:3 * C + 2 * D]
    gl = proj[:, 3 * C + 2 * D:3 * C + 2 * D + DG]

    w = -jax.nn.softplus(-(p['w0'].reshape(1, C)
                           + matmul_pallas(jnp.tanh(wl), p['w2'].astype(bf16)))) - 0.5
    a = jax.nn.sigmoid(p['a0'].reshape(1, C)
                       + matmul_pallas(al, p['a2'].astype(bf16)))
    g = matmul_pallas(jax.nn.sigmoid(gl), p['g2'].astype(bf16))

    v_first = v.reshape(B, T, C)                           # first layer group

    kk = (k * p['k_k'].reshape(1, C)).reshape(M, H, N)
    kk = kk / jnp.maximum(jnp.sqrt(jnp.sum(kk * kk, -1, keepdims=True)), 1e-12)
    kk = kk.reshape(M, C)
    k = k * (1.0 + (a - 1.0) * p['k_a'].reshape(1, C))

    def heads(t2d):
        return t2d.reshape(B, T, H, N)

    core = rwkv7_pallas(heads(r), heads(w), heads(k), heads(v),
                        heads(-kk), heads(kk * a))         # (B, T, C)

    # fused GroupNorm + r.k residual + gating
    yg = attn_tail_pallas(core.reshape(M, C), r, k, v, g,
                          p['gn_w'], p['gn_b'], p['r_k'], H, N)
    x_attn = matmul_pallas(yg, p['Wo'].astype(bf16)).reshape(B, T, C)
    x = x + x_attn

    # ---------------- FFN (RWKV_CMix_x070_v2) ----------------
    x2 = ln(x, p['ln2_w'], p['ln2_b'])
    xxf = time_shift(x2) - x2
    ffn_out = ffn_pallas(x2.reshape(M, C), xxf.reshape(M, C), p['ffn_x_k'],
                         p['Wk_ffn'].astype(bf16),
                         p['Wv_ffn'].astype(bf16)).reshape(B, T, C)
    x = x + ffn_out
    return x, v_first


def block_v2_forward(params, x, v_first, use_pallas=True):
    if use_pallas:
        return _forward_pallas(params, x, v_first)
    return _forward_ref(params, x, v_first)


# ----------------------------- deterministic params -----------------------------

def make_params(key, C, H, N, num_all_layers=2, group_id=0, loops_per_group=1):
    keys = jax.random.split(key, 12)
    r1 = 1.0 - group_id * loops_per_group / num_all_layers          # ratio_1_to_almost0
    r0 = group_id * loops_per_group / (num_all_layers - 1)          # ratio_0_to_1
    i = jnp.arange(C, dtype=jnp.float32)
    ddd = i / C
    linear = i / (C - 1) - 0.5
    zig = (jnp.mod(i, N) - (N - 1) / 2) / ((N - 1) / 2)
    zigzag = zig * jnp.abs(zig)
    www = -6.0 + 6.0 * (i / (C - 1)) ** (1.0 + 1.0 * r0 ** 0.3)

    D = max(32, int(round(1.8 * C ** 0.5 / 32) * 32))
    D_GATE = max(32, int(round(0.6 * C ** 0.8 / 32) * 32))

    def un(k, shape, lo, hi):
        return jax.random.uniform(k, shape, jnp.float32, lo, hi)

    def nr(k, shape, s):
        return jax.random.normal(k, shape, jnp.float32) * s

    # NOTE: torch inits some matrices (output, ffn value, LoRA *1) to zero;
    # here they are small random (deterministic) to actually exercise the kernels.
    return dict(
        ln0_w=jnp.ones(C), ln0_b=jnp.zeros(C),
        ln1_w=jnp.ones(C), ln1_b=jnp.zeros(C),
        ln2_w=jnp.ones(C), ln2_b=jnp.zeros(C),
        gn_w=jnp.ones(C), gn_b=jnp.zeros(C),
        x_r=1.0 - ddd ** (0.2 * r1), x_w=1.0 - ddd ** (0.9 * r1),
        x_k=1.0 - ddd ** (0.7 * r1), x_v=1.0 - ddd ** (0.7 * r1),
        x_a=1.0 - ddd ** (0.9 * r1), x_g=1.0 - ddd ** (0.2 * r1),
        w0=www + 0.5 + zigzag * 2.5,
        a0=-0.19 + zigzag * 0.3 + linear * 0.4,
        k_k=0.71 - linear * 0.1,
        k_a=jnp.full((C,), 1.02, jnp.float32),
        r_k=jnp.full((H, N), -0.04, jnp.float32),
        w1=nr(keys[0], (C, D), 0.1), w2=nr(keys[1], (D, C), 0.1),
        a1=nr(keys[2], (C, D), 0.1), a2=nr(keys[3], (D, C), 0.1),
        g1=nr(keys[4], (C, D_GATE), 0.1), g2=nr(keys[5], (D_GATE, C), 0.1),
        Wr=un(keys[6], (C, C), -0.5 / C ** 0.5, 0.5 / C ** 0.5),
        Wk=un(keys[7], (C, C), -0.05 / C ** 0.5, 0.05 / C ** 0.5),
        Wv=un(keys[8], (C, C), -0.5 / C ** 0.5, 0.5 / C ** 0.5),
        Wo=nr(keys[9], (C, C), 0.05),
        ffn_x_k=1.0 - ddd ** (r1 ** 4),
        Wk_ffn=un(keys[10], (C, 4 * C), -0.5 / C ** 0.5, 0.5 / C ** 0.5),
        Wv_ffn=nr(keys[11], (4 * C, C), 0.02),
    )


if __name__ == "__main__":
    B, T, C = 2, 8, 64
    head_size = 64                      # RUN_CUDA_RWKV7g hardcodes 64-wide heads
    H, N = C // head_size, head_size

    key = jax.random.PRNGKey(0)
    kp, kx = jax.random.split(key, 2)
    params = make_params(kp, C, H, N)
    x = jax.random.normal(kx, (B, T, C), jnp.float32)
    v_first_in = jnp.zeros((B, T, C), jnp.float32)  # unused at group 0, per module

    out, v_first = block_v2_forward(params, x, v_first_in, use_pallas=True)
    out = jax.block_until_ready(out)
    v_first = jax.block_until_ready(v_first)

    ref_out, ref_vf = block_v2_forward(params, x, v_first_in, use_pallas=False)
    ref_out = jax.block_until_ready(ref_out)

    err = float(jnp.max(jnp.abs(out - ref_out)))
    err_v = float(jnp.max(jnp.abs(v_first - ref_vf)))
    assert bool(jnp.all(jnp.isfinite(out)))
    assert err < 3e-2 and err_v < 3e-2, (err, err_v)
    print("KERNEL_OK")
</pallas_src>

<mosaic_0001>
module attributes {stable_mosaic.version = 11 : i64} {
  func.func @_ln_kernel(%arg0: i32, %arg1: memref<8x64xf32, #tpu.memory_space<vmem>>, %arg2: memref<1x64xf32, #tpu.memory_space<vmem>>, %arg3: memref<1x64xf32, #tpu.memory_space<vmem>>, %arg4: memref<8x64xf32, #tpu.memory_space<vmem>>) attributes {dimension_semantics = [#tpu.dimension_semantics<parallel>], iteration_bounds = array<i64: 2>, scalar_prefetch = 0 : i64, scratch_operands = 0 : i64, tpu.core_type = #tpu.core_type<tc>, window_params = [{transform_indices = @transform_0, window_bounds = array<i64: 8, 64>}, {pipeline_mode = #tpu.pipeline_mode<synchronous>, transform_indices = @transform_1, window_bounds = array<i64: 1, 64>}, {pipeline_mode = #tpu.pipeline_mode<synchronous>, transform_indices = @transform_2, window_bounds = array<i64: 1, 64>}, {transform_indices = @transform_3, window_bounds = array<i64: 8, 64>}]} {
    %c0 = arith.constant 0 : index
    %c0_0 = arith.constant 0 : index
    %0 = vector.load %arg1[%c0, %c0_0] : memref<8x64xf32, #tpu.memory_space<vmem>>, vector<8x64xf32>
    %cst = arith.constant dense<0.000000e+00> : vector<8xf32>
    %1 = vector.multi_reduction <add>, %0, %cst [1] : vector<8x64xf32> to vector<8xf32>
    %2 = vector.shape_cast %1 : vector<8xf32> to vector<8x1xf32>
    %cst_1 = arith.constant 6.400000e+01 : f32
    %3 = vector.broadcast %cst_1 : f32 to vector<8x1xf32>
    %4 = arith.divf %2, %3 : vector<8x1xf32>
    %5 = vector.broadcast %4 : vector<8x1xf32> to vector<8x64xf32>
    %6 = arith.subf %0, %5 : vector<8x64xf32>
    %7 = arith.mulf %6, %6 : vector<8x64xf32>
    %cst_2 = arith.constant dense<0.000000e+00> : vector<8xf32>
    %8 = vector.multi_reduction <add>, %7, %cst_2 [1] : vector<8x64xf32> to vector<8xf32>
    %9 = vector.shape_cast %8 : vector<8xf32> to vector<8x1xf32>
    %cst_3 = arith.constant 6.400000e+01 : f32
    %10 = vector.broadcast %cst_3 : f32 to vector<8x1xf32>
    %11 = arith.divf %9, %10 : vector<8x1xf32>
    %12 = vector.broadcast %4 : vector<8x1xf32> to vector<8x64xf32>
    %13 = arith.subf %0, %12 : vector<8x64xf32>
    %cst_4 = arith.constant 9.99999974E-6 : f32
    %14 = vector.broadcast %cst_4 : f32 to vector<8x1xf32>
    %15 = arith.addf %11, %14 : vector<8x1xf32>
    %16 = math.rsqrt %15 : vector<8x1xf32>
    %17 = vector.broadcast %16 : vector<8x1xf32> to vector<8x64xf32>
    %18 = arith.mulf %13, %17 : vector<8x64xf32>
    %c0_5 = arith.constant 0 : index
    %c0_6 = arith.constant 0 : index
    %19 = vector.load %arg2[%c0_5, %c0_6] : memref<1x64xf32, #tpu.memory_space<vmem>>, vector<1x64xf32>
    %20 = vector.broadcast %19 : vector<1x64xf32> to vector<8x64xf32>
    %21 = arith.mulf %18, %20 : vector<8x64xf32>
    %c0_7 = arith.constant 0 : index
    %c0_8 = arith.constant 0 : index
    %22 = vector.load %arg3[%c0_7, %c0_8] : memref<1x64xf32, #tpu.memory_space<vmem>>, vector<1x64xf32>
    %23 = vector.broadcast %22 : vector<1x64xf32> to vector<8x64xf32>
    %24 = arith.addf %21, %23 : vector<8x64xf32>
    %c0_9 = arith.constant 0 : index
    %c0_10 = arith.constant 0 : index
    %25 = vector.load %arg4[%c0_9, %c0_10] : memref<8x64xf32, #tpu.memory_space<vmem>>, vector<8x64xf32>
    tpu.vector_store %arg4[%c0_9, %c0_10], %24 {strides = array<i32>} : memref<8x64xf32, #tpu.memory_space<vmem>>, vector<8x64xf32>,
    return
  }
  func.func @transform_0(%arg0: i32) -> (i32, i32) {
    %c0_i32 = arith.constant 0 : i32
    %c0_i32_0 = arith.constant 0 : i32
    return %arg0, %c0_i32 : i32, i32
  }
  func.func @transform_1(%arg0: i32) -> (i32, i32) {
    %c0_i32 = arith.constant 0 : i32
    %c0_i32_0 = arith.constant 0 : i32
    %c0_i32_1 = arith.constant 0 : i32
    return %c0_i32, %c0_i32_0 : i32, i32
  }
  func.func @transform_2(%arg0: i32) -> (i32, i32) {
    %c0_i32 = arith.constant 0 : i32
    %c0_i32_0 = arith.constant 0 : i32
    %c0_i32_1 = arith.constant 0 : i32
    return %c0_i32, %c0_i32_0 : i32, i32
  }
  func.func @transform_3(%arg0: i32) -> (i32, i32) {
    %c0_i32 = arith.constant 0 : i32
    %c0_i32_0 = arith.constant 0 : i32
    return %arg0, %c0_i32 : i32, i32
  }
}

</mosaic_0001>

<bundles_post_ra>
// kernel: tpu_custom_call.1
= control target key start
LH: loop header
LB: loop body
LE: loop exit
PB: predicated region body
PF: predicated region fallthrough
CT: control target
= control target key end

     0   :  { %8 = vsyncpa [#allocation3], 0  ;;  %s655_s0 = inlined_call_operand.hbm [shape: f32[16,64], index: 0, kind: input, shape index: {}]   ;;  %s656_s1 = inlined_call_operand.vmem [shape: f32[1,64], index: 1, kind: input, shape index: {}]   ;;  %s657_s2 = inlined_call_operand.vmem [shape: f32[1,64], index: 2, kind: input, shape index: {}]   ;;  %s658_s3 = inlined_call_operand.hbm [shape: f32[16,64], index: 3, kind: output, shape index: {}]  }
   0x1   :  { %10 = vsyncpa [#allocation3 + $0x1], 0 }
   0x2   :  { %11 = vsyncpa [#allocation4], 0 }
   0x3   :  { %13 = vsyncpa [#allocation4 + $0x1], 0  ;;  %s485_s12 = smov 0   ;;  %s487_s13 = smov 0  }
   0x4   :  { %s489_s14 = smov 0   ;;  %s491_s15 = smov 0  }
   0x5 LB: > { %s506_s16 = sadd.s32 4294967295, %s461_s15   ;;  %s303_s17 = sadd.s32 4294967294, %s461_s15   ;;  %s461_s15 = sphi %s491_s15, %s673_s15   ;;  %s457_s14 = sphi %s489_s14, %s672_s14   ;;  %s453_s13 = sphi %s487_s13, %s671_s13   ;;  %s449_s12 = sphi %s485_s12, %s670_s12  }
   0x6   : > { %s510_s18 = sadd.s32 1, %s461_s15   ;;  %s26_s19 = sadd.s32 1, %s457_s14 }
   0x7   : > { %s23_s20 = ssub.s32 %s461_s15, %s510_s18  ;;  %p33_p0 = scmp.ne.s32.totalorder %s457_s14, %s453_s13 }
   0x8   : > { %p24_p1 = scmp.eq.s32.totalorder %s23_s20, 0  ;;  %p34_p2 = scmp.eq.s32.totalorder %s461_s15, 0 }
   0x9   : > { %p39_p3 = scmp.ne.s32.totalorder %s453_s13, %s449_s12  ;;  %p40_p4 = scmp.eq.s32.totalorder %s506_s16, 0 }
   0xa   : > { %s522_s21 = scalar_select %p24_p1, %s457_s14, %s26_s19  }
   0xb   : > { %p524_p5 = por %p34_p2, %p33_p0  ;;  %p528_p6 = por %p40_p4, %p39_p3 }
   0xc   : > { %p105_p7 = scmp.eq.s32.totalorder %s506_s16, 1  ;;  %p111_p8 = scmp.eq.s32.totalorder %s303_s17, 1 }
   0xd   : > { %p329_p10 = scmp.lt.s32.totalorder %s461_s15, 2  ;;  %s137_s26 = sand.u32 1, %s457_s14  }
   0xe   : > { %p535_p11 = por %p105_p7, %p33_p0  ;;  %p539_p12 = por %p111_p8, %p39_p3 }
   0xf   : > { %s307_s27 = sshll.u32 %s461_s15, 7  ;;  %s306_s28 = sshll.u32 %s137_s26, 3 }
  0x10   : > { %s662_s24 = scalar_select %p535_p11, 1, 0 }
  0x11   : > { %s663_s25 = scalar_select %p539_p12, 1, 0 }
  0x12   : > { %s548_s4 = scalar_lea.hbm %s655_s0, %s307_s27  ;;  %s141_s5 = scalar_lea.vmem [#allocation2], %s306_s28 }
  0x13   : > { %s148_s6 = sshll.u32 %s141_s5, 4  ;;  %p552_p13 = pnand %p329_p10, %p524_p5  ;;  %s556_s6 = int_to_ptr.vmem [resolvable:$true] %s148_s6 }
  0x14   : > { %s138_s8 = scalar_lea.sflag [#allocation3], %s137_s26  ;;  %s365_s9 = scalar_lea.hbm %s548_s4, 128 }
  0x15   : > { %p366_p2 = scmp.ne.s32.totalorder %s548_s4, %s365_s9  ;;  %p367_p3 = pneg %p552_p13 }
  0x16   : > { %s370_s17 = scalar_lea.hbm %s655_s0, 256  ;;  %p371_p5 = scmp.lt.u32.totalorder %s548_s4, %s655_s0 }
  0x17   : > { %p368_p4 = pnand %p367_p3, %p366_p2  ;;  %p372_p8 = scmp.lt.u32.totalorder %s370_s17, %s365_s9 }
  0x18   : > { %p374_p9 = scmp.lt.u32.totalorder %s365_s9, %s548_s4 }
  0x19   : > { %p369_p7 = pneg %p368_p4  ;;  %p373_p10 = por %p372_p8, %p371_p5 }
  0x1b   : > { %p375_p0 = por %p374_p9, %p373_p10 }
  0x1d   : > { %p376_p1 = pnand %p375_p0, %p369_p7 }
  0x1f   : > { %379 = shalt.err (!%p376_p1)
}
  0x20   : > { %s380_s22 = scalar_lea.vmem %s556_s6, 128  ;;  %s463_s26 = smov [#allocation2]  }
  0x21   : > { %p381_p2 = scmp.ne.s32.totalorder %s556_s6, %s380_s22  ;;  %s385_s27 = sshll.u32 %s463_s26, 4  ;;  %s386_s27 = int_to_ptr.vmem [resolvable:$false] %s385_s27 }
  0x22   : > { %s387_s28 = scalar_lea.vmem %s386_s27, 256  ;;  %p388_p11 = scmp.lt.s32.totalorder %s556_s6, %s386_s27 }
  0x23   : > { %p383_p4 = pnand %p381_p2, %p367_p3  ;;  %p389_p5 = scmp.lt.s32.totalorder %s387_s28, %s380_s22 }
  0x25   : > { %p384_p12 = pneg %p383_p4  ;;  %p390_p8 = por %p389_p5, %p388_p11 }
  0x27   : > { %p391_p9 = pnand %p390_p8, %p384_p12 }
  0x29   : > { %394 = shalt.err (!%p391_p9)
}
  0x2a   : > { %324 = dma.hbm_to_vmem [thread:$0]  (!%p552_p13), %s548_s4, 128, %s556_s6, %s138_s8  }
  0x2b   : > { %p665_p0 = scmp.lt.s32.totalorder %s461_s15, 3  ;;  %p666_p1 = scmp.ge.s32.totalorder %s461_s15, 1 }
  0x2d   : > { %p154_p3 = pnand %p666_p1, %p665_p0 }
  0x2e   : > { %s590_s29 = sand.u32 (!%p154_p3), 1, %s453_s13  }
  0x2f   : > { %157 = sbr.rel (%p154_p3) target bundleno = 383 (0x17f), region = 32  ;;  %s309_s30 = sshll.u32 (!%p154_p3), %s590_s29, 3 }
  0x30   : > { %s160_s5 = scalar_lea.sflag (!%p154_p3), [#allocation3], %s590_s29  ;;  %s163_s9 = scalar_lea.vmem (!%p154_p3), [#allocation2], %s309_s30 }
  0x36   : > { %440 = dma.done.wait (%p528_p6), %s160_s5, 128  }
  0x37   : > { %442 = vsyncadd (%p528_p6), %s160_s5, 4294967168  ;;  %vm187_vm0 = vcmask 523264   ;;  %v186_v0 = vld [vmem:[%s163_s9] sm:$0xff]  ;;  %s314_s8 = sshll.u32 %s506_s16, 7  ;;  %s185_s10 = scalar_lea.vmem [#allocation5], %s309_s30 }
  0x38   : > { %v188_v1 = vsel %vm187_vm0, %v186_v0, 0.0  ;;  %v311_v11 = vld [vmem:[%s656_s1] ss:$0 sm:$0xff]  ;;  %s233_s11 = sshll.u32 %s185_s10, 4  ;;  %s610_s20 = scalar_lea.hbm %s658_s3, %s314_s8  ;;  %s612_s11 = int_to_ptr.vmem [resolvable:$true] %s233_s11 }
  0x39   : > { %189 = vadd.xlane.f32.xlu0 %v188_v1  ;;  %v312_v13 = vld [vmem:[%s657_s2] ss:$0 sm:$0xff]  ;;  %s220_s22 = scalar_lea.sflag [#allocation4], %s590_s29  ;;  %s395_s26 = scalar_lea.vmem %s612_s11, 128 }
  0x3a   : > { %p396_p6 = scmp.ne.s32.totalorder %s612_s11, %s395_s26  ;;  %p667_p11 = scmp.ne.s32.totalorder %s662_s24, 0 }
  0x3b   : > { %s464_s16 = smov [#allocation5]  }
  0x3c   : > { %p397_p12 = pnand %p396_p6, %p667_p11  ;;  %s399_s27 = sshll.u32 %s464_s16, 4  ;;  %s400_s27 = int_to_ptr.vmem [resolvable:$false] %s399_s27 }
  0x3d   : > { %s401_s28 = scalar_lea.vmem %s400_s27, 256  ;;  %p402_p7 = scmp.lt.s32.totalorder %s612_s11, %s400_s27 }
  0x3e   : > { %p398_p13 = pneg %p397_p12  ;;  %p403_p10 = scmp.lt.s32.totalorder %s401_s28, %s395_s26 }
  0x40   : > { %p404_p2 = por %p403_p10, %p402_p7 }
  0x42   : > { %p405_p4 = pnand %p404_p2, %p398_p13 }
  0xc6   : > { %v190_v2 = vpop.xlane.xlu0 %189 }
  0xc7   : > { %v192_v3 = vmul.f32 0.015625, %v190_v2 }
  0xc9   : > { %v193_v4 = vsub.f32 %v186_v0, %v192_v3 }
  0xcb   : > { %v194_v5 = vmul.f32 %v193_v4, %v193_v4 }
  0xcd   : > { %v195_v6 = vsel %vm187_vm0, %v194_v5, 0.0 }
  0xce   : > { %196 = vadd.xlane.f32.xlu0 %v195_v6 }
 0x15b   : > { %v197_v7 = vpop.xlane.xlu0 %196 }
 0x15c   : > { %v198_v8 = vmul.f32 0.015625, %v197_v7 }
 0x15e   : > { %v199_v9 = vadd.f32 1e-05, %v198_v8 }
 0x160   : > { %363 = vrsqrt.f32 %v199_v9 }
 0x16a   : > { %v364_v10 = vpop.eup %363 }
 0x16b   : > { %v201_v12 = vmul.f32 %v364_v10, %v193_v4 }
 0x16d   : > { %v209_v14 = vmul.f32 %v311_v11, %v201_v12 }
 0x16f   : > { %v217_v15 = vadd.f32 %v312_v13, %v209_v14 }
 0x171   : > { %218 = vst.msk [vmem:[%s185_s10] sm:$0xff] %vm187_vm0, %v217_v15 }
 0x172   : > { %408 = shalt.err (!%p405_p4)
}
 0x173   : > { %s409_s29 = scalar_lea.hbm %s610_s20, 128  ;;  %s413_s9 = scalar_lea.hbm %s658_s3, 256 }
 0x174   : > { %p410_p5 = scmp.ne.s32.totalorder %s610_s20, %s409_s29  ;;  %p414_p0 = scmp.lt.u32.totalorder %s610_s20, %s658_s3 }
 0x175   : > { %p415_p1 = scmp.lt.u32.totalorder %s413_s9, %s409_s29  ;;  %p417_p6 = scmp.lt.u32.totalorder %s409_s29, %s610_s20 }
 0x176   : > { %p411_p8 = pnand %p410_p5, %p667_p11 }
 0x177   : > { %p416_p3 = por %p415_p1, %p414_p0 }
 0x178   : > { %p412_p9 = pneg %p411_p8 }
 0x179   : > { %p418_p12 = por %p417_p6, %p416_p3 }
 0x17b   : > { %p419_p13 = pnand %p418_p12, %p412_p9 }
 0x17d   : > { %422 = shalt.err (!%p419_p13)
}
 0x17e   : > { %319 = dma.vmem_to_hbm [thread:$0]  (%p667_p11), %s612_s11, 128, %s610_s20, %s220_s22  }
 0x17f PF: > { %s245_s6 = sand.u32 1, %s449_s12   ;;  %p668_p7 = scmp.ne.s32.totalorder %s663_s25, 0 }
 0x180   : > { %p669_p10 = scmp.ge.s32.totalorder %s461_s15, 2  ;;  %s246_s7 = scalar_lea.sflag [#allocation4], %s245_s6 }
 0x182   : > { %p326_p2 = pnand %p669_p10, %p668_p7 }
 0x184   : > { %444 = dma.done.wait (!%p326_p2), %s246_s7, 128  }
 0x185   : > { %446 = vsyncadd (!%p326_p2), %s246_s7, 4294967168  ;;  %p16_p4 = scmp.ge.s32.totalorder %s510_s18, 4   ;;  %s670_s12 = smov %s453_s13 }
 0x186   : > { %s671_s13 = smov %s457_s14  ;;  %s672_s14 = smov %s522_s21 }
 0x187   : > { %s673_s15 = smov %s510_s18  ;;  %18 = sbr.rel (!%p16_p4) target bundleno = 5 (0x5), region = 77 }
 0x18e   :  { %251 = vsyncpa [#allocation3], 1 }
 0x18f   :  { %253 = vsyncpa [#allocation3 + $0x1], 1 }
 0x190   :  { %254 = vsyncpa [#allocation4], 1 }
 0x191   :  { %256 = vsyncpa [#allocation4 + $0x1], 1 }

</bundles_post_ra>
